<compile_context>
chip_gen: v7x
topology: tpu7x:2x2x1
jax: 0.10.0
libtpu: 0.0.40
codegen_flags: <defaults>
</compile_context>

<pallas_src>
import jax
import jax.numpy as jnp
from jax.experimental import pallas as pl
from jax.experimental.pallas import tpu as pltpu

LN_EPS = 1e-5


def _time_interval_encoding_kernel(x_ref, t_ref, p_ref, o_ref):
    # x_ref: (TN, D) input feature tile
    # t_ref: (TN, 1) time intervals (column)
    # p_ref: (4, D)  stacked params: [w, b, gamma, beta]
    x = x_ref[...].astype(jnp.float32)          # (TN, D)
    t = t_ref[...].astype(jnp.float32)          # (TN, 1)
    p = p_ref[...].astype(jnp.float32)          # (4, D)
    w, b, gamma, beta = p[0:1, :], p[1:2, :], p[2:3, :], p[3:4, :]

    # Linear(1, d_model): time_embed[n, d] = t[n] * w[d] + b[d]
    y = x + t * w + b                           # (TN, D)

    # Two-pass LayerNorm over the last dim (matches nn.LayerNorm, f32 math).
    # Compute is free filler under the HBM DMA, so the dependent reduce chain
    # costs nothing vs. the one-pass E[y^2]-E[y]^2 form and is more accurate.
    inv_d = jnp.float32(1.0 / y.shape[-1])
    mean = jnp.sum(y, axis=-1, keepdims=True) * inv_d
    yc = y - mean
    var = jnp.sum(yc * yc, axis=-1, keepdims=True) * inv_d
    inv = jax.lax.rsqrt(var + LN_EPS)           # EUP slot, free alongside VPU
    out = yc * inv * gamma + beta

    # Dropout: identity in eval / deterministic inference mode.
    # TODO(synk): training-mode dropout would need pltpu.prng_seed / prng_random_bits.
    o_ref[...] = out.astype(o_ref.dtype)


def _round_up(n, m):
    return (n + m - 1) // m * m


def time_interval_encoding(x, time_intervals, w, b, gamma, beta, *, row_tile=None):
    """x: (B, S, D); time_intervals: (B, S).

    w: (D,) Linear(1, D).weight (column squeezed), b: (D,) Linear(1, D).bias,
    gamma/beta: (D,) LayerNorm affine params. Output dtype matches x (bf16 I/O
    supported; LN math runs in f32 inside the kernel).
    """
    B, S, D = x.shape
    N = B * S
    x2d = x.reshape(N, D)
    # Pass t through in its own dtype; the in-kernel cast is hidden under DMA.
    t2d = time_intervals.reshape(N, 1)
    # Fold the four (D,) parameter vectors into one small (4, D) block.
    params = jnp.stack(
        [w.reshape(D), b.reshape(D), gamma.reshape(D), beta.reshape(D)], axis=0
    )

    lane = 128
    d_pad = _round_up(D, lane)
    x_isz = jnp.dtype(x.dtype).itemsize
    t_isz = jnp.dtype(time_intervals.dtype).itemsize

    # Per-row VMEM footprint of one grid step:
    #   2x double-buffered x tile + 2x double-buffered out tile (lane-padded),
    #   2x double-buffered time column -- a (rows, 1) block pads to 128 lanes
    #   in VMEM, so it costs 128*itemsize per row, not itemsize --
    #   plus ~2 live f32 intermediate tiles (y / centered y) in the body.
    # TODO(synk): a lane-dense (1, row_tile) t layout would shrink this further
    # but needs an in-kernel lane->sublane relayout; padded size is budgeted
    # here instead.
    per_row = (2 * d_pad * x_isz          # x in  (double buffered)
               + 2 * d_pad * x_isz        # out   (double buffered)
               + 2 * lane * t_isz         # t col (padded to 128 lanes)
               + 2 * d_pad * 4)           # f32 intermediates in the kernel body
    per_row = max(per_row, 1)

    try:
        vmem_cap = int(pltpu.get_tpu_info().vmem_capacity_bytes)
    except Exception:
        vmem_cap = 64 * 1024 * 1024       # v7x per-TC size: safe lower bound

    if row_tile is None:
        # Spend up to half of physical VMEM on this kernel's buffers:
        # ~32 MiB on v7x (64 MiB/TC), ~64 MiB on v5e/v6e (128 MiB).
        budget = min(vmem_cap // 2, 64 * 1024 * 1024)
        rows = max(8, budget // per_row)
        # Cap the x tile around 8 MiB (diminishing returns past ~85-90% of the
        # HBM roofline).
        rows = min(rows, max(8, (8 * 1024 * 1024) // (d_pad * x_isz)))
        # Keep >= ~8 grid steps when N is large so both v7x TensorCores get
        # work and the double-buffered pipeline actually overlaps.
        rows = min(rows, max(512, -(-N // 8)))
        row_tile = max(8, (rows // 8) * 8)
    # Never tile wider than the (sublane-rounded) problem itself.
    row_tile = min(row_tile, _round_up(N, 8))

    grid = (pl.cdiv(N, row_tile),)

    # Scoped-VMEM limit: actual estimated need + margin, clamped under the
    # physical capacity of the current generation.
    est_vmem = row_tile * per_row + 2 * 8 * d_pad * 4 + (1 << 20)
    vmem_limit = int(min(vmem_cap * 7 // 8,
                         max(32 * 1024 * 1024, est_vmem + 8 * 1024 * 1024)))

    bytes_accessed = 2 * N * D * x_isz + N * t_isz + 4 * D * 4
    cost = pl.CostEstimate(
        flops=10 * N * D,
        transcendentals=N,
        bytes_accessed=bytes_accessed,
    )

    out2d = pl.pallas_call(
        _time_interval_encoding_kernel,
        out_shape=jax.ShapeDtypeStruct((N, D), x.dtype),
        grid=grid,
        in_specs=[
            pl.BlockSpec((row_tile, D), lambda i: (i, 0)),   # x rows, streamed
            pl.BlockSpec((row_tile, 1), lambda i: (i, 0)),   # time intervals
            pl.BlockSpec((4, D), lambda i: (0, 0)),          # w/b/gamma/beta
        ],
        out_specs=pl.BlockSpec((row_tile, D), lambda i: (i, 0)),
        compiler_params=pltpu.CompilerParams(
            # Row tiles are independent -> shard the 1-D grid across v7x's two
            # TensorCores; harmless no-op on v5e/v6e.
            dimension_semantics=("parallel",),
            vmem_limit_bytes=vmem_limit,
        ),
        cost_estimate=cost,
    )(x2d, t2d, params)

    return out2d.reshape(B, S, D)


if __name__ == "__main__":
    # d_model = 128: lane-dense stores (last dim a multiple of 128). The kernel
    # also works for smaller D, just at reduced lane occupancy.
    B, S, D = 2, 8, 128

    key = jax.random.PRNGKey(0)
    kx, kt, kw, kb = jax.random.split(key, 4)

    x = jax.random.normal(kx, (B, S, D), dtype=jnp.float32)
    time_intervals = jax.random.uniform(kt, (B, S), dtype=jnp.float32) * 10.0

    # Deterministic parameter init (synthetic, not a checkpoint load).
    w = jax.random.normal(kw, (D,), dtype=jnp.float32) * 0.1   # Linear(1, D).weight
    b = jax.random.normal(kb, (D,), dtype=jnp.float32) * 0.01  # Linear(1, D).bias
    gamma = jnp.ones((D,), dtype=jnp.float32)                  # LayerNorm.weight
    beta = jnp.zeros((D,), dtype=jnp.float32)                  # LayerNorm.bias

    out = time_interval_encoding(x, time_intervals, w, b, gamma, beta)
    out = jax.block_until_ready(out)

    # Pure-JAX reference check (two-pass LayerNorm, matches nn.LayerNorm).
    te = time_intervals[..., None] * w[None, None, :] + b[None, None, :]
    y = x + te
    mu = jnp.mean(y, axis=-1, keepdims=True)
    var = jnp.mean((y - mu) ** 2, axis=-1, keepdims=True)
    ref = (y - mu) / jnp.sqrt(var + LN_EPS) * gamma + beta
    assert jnp.allclose(out, ref, atol=1e-5, rtol=1e-5), "mismatch vs reference"

    print("KERNEL_OK")
</pallas_src>

<mosaic_0001>
module attributes {stable_mosaic.version = 11 : i64} {
  func.func @_time_interval_encoding_kernel(%arg0: i32, %arg1: memref<16x128xf32, #tpu.memory_space<vmem>>, %arg2: memref<16x1xf32, #tpu.memory_space<vmem>>, %arg3: memref<4x128xf32, #tpu.memory_space<vmem>>, %arg4: memref<16x128xf32, #tpu.memory_space<vmem>>) attributes {dimension_semantics = [#tpu.dimension_semantics<parallel>], iteration_bounds = array<i64: 1>, scalar_prefetch = 0 : i64, scratch_operands = 0 : i64, tpu.core_type = #tpu.core_type<tc>, window_params = [{transform_indices = @transform_0, window_bounds = array<i64: 16, 128>}, {transform_indices = @transform_1, window_bounds = array<i64: 16, 1>}, {pipeline_mode = #tpu.pipeline_mode<synchronous>, transform_indices = @transform_2, window_bounds = array<i64: 4, 128>}, {transform_indices = @transform_3, window_bounds = array<i64: 16, 128>}]} {
    %c0 = arith.constant 0 : index
    %c0_0 = arith.constant 0 : index
    %0 = vector.load %arg1[%c0, %c0_0] : memref<16x128xf32, #tpu.memory_space<vmem>>, vector<16x128xf32>
    %c0_1 = arith.constant 0 : index
    %c0_2 = arith.constant 0 : index
    %1 = vector.load %arg2[%c0_1, %c0_2] : memref<16x1xf32, #tpu.memory_space<vmem>>, vector<16x1xf32>
    %c0_3 = arith.constant 0 : index
    %c0_4 = arith.constant 0 : index
    %2 = vector.load %arg3[%c0_3, %c0_4] : memref<4x128xf32, #tpu.memory_space<vmem>>, vector<4x128xf32>
    %3 = vector.extract_strided_slice %2 {offsets = [0, 0], sizes = [1, 128], strides = [1, 1]} : vector<4x128xf32> to vector<1x128xf32>
    %4 = vector.extract_strided_slice %2 {offsets = [1, 0], sizes = [1, 128], strides = [1, 1]} : vector<4x128xf32> to vector<1x128xf32>
    %5 = vector.extract_strided_slice %2 {offsets = [2, 0], sizes = [1, 128], strides = [1, 1]} : vector<4x128xf32> to vector<1x128xf32>
    %6 = vector.extract_strided_slice %2 {offsets = [3, 0], sizes = [1, 128], strides = [1, 1]} : vector<4x128xf32> to vector<1x128xf32>
    %7 = vector.broadcast %1 : vector<16x1xf32> to vector<16x128xf32>
    %8 = vector.broadcast %3 : vector<1x128xf32> to vector<16x128xf32>
    %9 = arith.mulf %7, %8 : vector<16x128xf32>
    %10 = arith.addf %0, %9 : vector<16x128xf32>
    %11 = vector.broadcast %4 : vector<1x128xf32> to vector<16x128xf32>
    %12 = arith.addf %10, %11 : vector<16x128xf32>
    %cst = arith.constant dense<0.000000e+00> : vector<16xf32>
    %13 = vector.multi_reduction <add>, %12, %cst [1] : vector<16x128xf32> to vector<16xf32>
    %14 = vector.shape_cast %13 : vector<16xf32> to vector<16x1xf32>
    %cst_5 = arith.constant 7.812500e-03 : f32
    %15 = vector.broadcast %cst_5 : f32 to vector<16x1xf32>
    %16 = arith.mulf %14, %15 : vector<16x1xf32>
    %17 = vector.broadcast %16 : vector<16x1xf32> to vector<16x128xf32>
    %18 = arith.subf %12, %17 : vector<16x128xf32>
    %19 = arith.mulf %18, %18 : vector<16x128xf32>
    %cst_6 = arith.constant dense<0.000000e+00> : vector<16xf32>
    %20 = vector.multi_reduction <add>, %19, %cst_6 [1] : vector<16x128xf32> to vector<16xf32>
    %21 = vector.shape_cast %20 : vector<16xf32> to vector<16x1xf32>
    %cst_7 = arith.constant 7.812500e-03 : f32
    %22 = vector.broadcast %cst_7 : f32 to vector<16x1xf32>
    %23 = arith.mulf %21, %22 : vector<16x1xf32>
    %cst_8 = arith.constant 9.99999974E-6 : f32
    %24 = vector.broadcast %cst_8 : f32 to vector<16x1xf32>
    %25 = arith.addf %23, %24 : vector<16x1xf32>
    %26 = math.rsqrt %25 : vector<16x1xf32>
    %27 = vector.broadcast %26 : vector<16x1xf32> to vector<16x128xf32>
    %28 = arith.mulf %18, %27 : vector<16x128xf32>
    %29 = vector.broadcast %5 : vector<1x128xf32> to vector<16x128xf32>
    %30 = arith.mulf %28, %29 : vector<16x128xf32>
    %31 = vector.broadcast %6 : vector<1x128xf32> to vector<16x128xf32>
    %32 = arith.addf %30, %31 : vector<16x128xf32>
    %c0_9 = arith.constant 0 : index
    %c0_10 = arith.constant 0 : index
    %33 = vector.load %arg4[%c0_9, %c0_10] : memref<16x128xf32, #tpu.memory_space<vmem>>, vector<16x128xf32>
    tpu.vector_store %arg4[%c0_9, %c0_10], %32 {strides = array<i32>} : memref<16x128xf32, #tpu.memory_space<vmem>>, vector<16x128xf32>,
    return
  }
  func.func @transform_0(%arg0: i32) -> (i32, i32) {
    %c0_i32 = arith.constant 0 : i32
    %c0_i32_0 = arith.constant 0 : i32
    return %arg0, %c0_i32 : i32, i32
  }
  func.func @transform_1(%arg0: i32) -> (i32, i32) {
    %c0_i32 = arith.constant 0 : i32
    %c0_i32_0 = arith.constant 0 : i32
    return %arg0, %c0_i32 : i32, i32
  }
  func.func @transform_2(%arg0: i32) -> (i32, i32) {
    %c0_i32 = arith.constant 0 : i32
    %c0_i32_0 = arith.constant 0 : i32
    %c0_i32_1 = arith.constant 0 : i32
    return %c0_i32, %c0_i32_0 : i32, i32
  }
  func.func @transform_3(%arg0: i32) -> (i32, i32) {
    %c0_i32 = arith.constant 0 : i32
    %c0_i32_0 = arith.constant 0 : i32
    return %arg0, %c0_i32 : i32, i32
  }
}

</mosaic_0001>

<bundles_post_ra>
// kernel: tpu_custom_call.1
= control target key start
LH: loop header
LB: loop body
LE: loop exit
PB: predicated region body
PF: predicated region fallthrough
CT: control target
= control target key end

     0   :  { %v30_v1 = vlaneseq  ;;  %v129_v2 = vmov 0   ;;  %s180_s0 = inlined_call_operand.vmem [shape: f32[16,128], index: 0, kind: input, shape index: {}]   ;;  %s181_s1 = inlined_call_operand.vmem [shape: f32[16,1], index: 1, kind: input, shape index: {}]   ;;  %s182_s2 = inlined_call_operand.vmem [shape: f32[4,128], index: 2, kind: input, shape index: {}]   ;;  %s183_s3 = inlined_call_operand.hbm [shape: f32[16,128], index: 3, kind: output, shape index: {}]  }
   0x1   :  { %v17_v0 = vld [vmem:[%s181_s1] sm:$0xff]  ;;  %100 = vset.pattern.permute.xlu0 %v129_v2 }
   0x2   :  { %8 = vsyncpa [#allocation3], 0  ;;  %22 = vperm.xlu0 %100, %v17_v0   ;;  %v31_v3 = vshrl.u32 %v30_v1, 7  ;;  %v18_v4 = vld [vmem:[%s181_s1 + $0x8] sm:$0xff]  ;;  %v19_v7 = vld [vmem:[%s182_s2] sm:$0xf] }
   0x3   :  { %v15_v14 = vld [vmem:[%s180_s0] sm:$0xff]  ;;  %v16_v19 = vld [vmem:[%s180_s0 + $0x8] sm:$0xff]  ;;  %s130_s0 = smov [#allocation2]  }
   0x4   :  { %v68_v5 = vsub.s32 2, %v31_v3  ;;  %v74_v6 = vsub.s32 3, %v31_v3  ;;  %v32_v10 = vsub.s32 0, %v31_v3  ;;  %v40_v12 = vsub.s32 1, %v31_v3  ;;  %s85_s2 = sshll.u32 %s130_s0, 4  ;;  %s86_s2 = int_to_ptr.vmem [resolvable:$true] %s85_s2 }
   0x5   :  { %s105_s21 = scalar_lea.vmem %s86_s2, 256  ;;  %p110_p1 = scmp.lt.s32.totalorder %s86_s2, %s86_s2 }
   0x6   :  { %27 = vperm.xlu0 %100, %v18_v4   ;;  %v69_v8 = vrot.slane %v19_v7, %v68_v5  ;;  %v75_v9 = vrot.slane %v19_v7, %v74_v6  ;;  %v33_v11 = vrot.slane %v19_v7, %v32_v10  ;;  %v41_v16 = vrot.slane %v19_v7, %v40_v12  ;;  %p106_p0 = scmp.ne.s32.totalorder %s86_s2, %s105_s21  ;;  %p111_p2 = scmp.lt.s32.totalorder %s105_s21, %s105_s21 }
   0x8   :  { %p112_p3 = por %p111_p2, %p110_p1 }
   0xa   :  { %p113_p4 = pnand %p112_p3, %p106_p0 }
  0x81   :  { %v23_v13 = vpop.permute.xlu0 %22 }
  0x82   :  { %v34_v15 = vmul.f32 %v33_v11, %v23_v13 }
  0x84   :  { %v36_v17 = vadd.f32 %v34_v15, %v15_v14 }
  0x85   :  { %v28_v18 = vpop.permute.xlu0 %27 }
  0x86   :  { %v35_v20 = vmul.f32 %v33_v11, %v28_v18  ;;  %v42_v21 = vadd.f32 %v41_v16, %v36_v17 }
  0x88   :  { %v37_v22 = vadd.f32 %v35_v20, %v16_v19  ;;  %44 = vadd.xlane.f32.xlu1 %v42_v21 }
  0x8a   :  { %v43_v23 = vadd.f32 %v41_v16, %v37_v22 }
  0x8c   :  { %46 = vadd.xlane.f32.xlu1 %v43_v23 }
 0x115   :  { %v45_v24 = vpop.xlane.xlu1 %44 }
 0x116   :  { %v48_v25 = vmul.f32 0.0078125, %v45_v24 }
 0x118   :  { %v50_v26 = vsub.f32 %v42_v21, %v48_v25 }
 0x119   :  { %v47_v27 = vpop.xlane.xlu1 %46 }
 0x11a   :  { %v49_v28 = vmul.f32 0.0078125, %v47_v27  ;;  %v52_v29 = vmul.f32 %v50_v26, %v50_v26 }
 0x11c   :  { %v51_v30 = vsub.f32 %v43_v23, %v49_v28  ;;  %54 = vadd.xlane.f32.xlu0 %v52_v29 }
 0x11e   :  { %v53_v31 = vmul.f32 %v51_v30, %v51_v30 }
 0x120   :  { %56 = vadd.xlane.f32.xlu1 %v53_v31 }
 0x1a9   :  { %v55_v32 = vpop.xlane.xlu0 %54 }
 0x1aa   :  { %v58_v33 = vmul.f32 0.0078125, %v55_v32 }
 0x1ac   :  { %v60_v34 = vadd.f32 1e-05, %v58_v33 }
 0x1ad   :  { %v57_v35 = vpop.xlane.xlu1 %56 }
 0x1ae   :  { %101 = vrsqrt.f32 %v60_v34  ;;  %v59_v36 = vmul.f32 0.0078125, %v57_v35 }
 0x1b0   :  { %v61_v37 = vadd.f32 1e-05, %v59_v36 }
 0x1b2   :  { %103 = vrsqrt.f32 %v61_v37 }
 0x1b8   :  { %v102_v38 = vpop.eup %101 }
 0x1b9   :  { %v64_v39 = vmul.f32 %v102_v38, %v50_v26 }
 0x1bb   :  { %v70_v40 = vmul.f32 %v69_v8, %v64_v39 }
 0x1bc   :  { %v104_v41 = vpop.eup %103 }
 0x1bd   :  { %v65_v42 = vmul.f32 %v104_v41, %v51_v30  ;;  %v76_v43 = vadd.f32 %v75_v9, %v70_v40 }
 0x1bf   :  { %v71_v44 = vmul.f32 %v69_v8, %v65_v42  ;;  %78 = vst [vmem:[#allocation2] sm:$0xff] %v76_v43 }
 0x1c1   :  { %v77_v45 = vadd.f32 %v75_v9, %v71_v44 }
 0x1c3   :  { %79 = vst [vmem:[#allocation2 + $0x8] sm:$0xff] %v77_v45 }
 0x1c4   :  { %116 = shalt.err (!%p113_p4)
}
 0x1c5   :  { %s117_s24 = scalar_lea.hbm %s183_s3, 256 }
 0x1c6   :  { %p118_p5 = scmp.ne.s32.totalorder %s183_s3, %s117_s24  ;;  %p121_p6 = scmp.lt.u32.totalorder %s117_s24, %s183_s3 }
 0x1c8   :  { %p123_p7 = pnand %p121_p6, %p118_p5 }
 0x1ca   :  { %126 = shalt.err (!%p123_p7)
}
 0x1cb   :  { %s131_s29 = smov 128   ;;  %s132_s30 = smov 8  }
 0x1cc   :  { %91 = dma.vmem_to_hbm [thread:$0]  %s86_s2, 256, %s183_s3, [#allocation3], %s131_s29, %s131_s29, %s132_s30  }
 0x1cd   :  { %127 = dma.done.wait [#allocation3], 256  }
 0x1ce   :  { %128 = vsyncadd [#allocation3], 4294967040 }
 0x1cf   :  { %95 = vsyncpa [#allocation3], 1 }

</bundles_post_ra>
